<compile_context>
chip_gen: v6e
topology: v6e:2x2x1
jax: 0.10.0
libtpu: 0.0.40
codegen_flags: <defaults>
</compile_context>

<pallas_src>
import jax
import jax.numpy as jnp
from jax.experimental import pallas as pl
from jax.experimental.pallas import tpu as pltpu


# -----------------------------------------------------------------------------
# Shared math helpers (identical in kernel and reference)
# -----------------------------------------------------------------------------
def _gelu(x):
    # tanh-approximate GELU (tanh goes to the EUP slot on TPU)
    c = 0.7978845608028654  # sqrt(2/pi)
    return 0.5 * x * (1.0 + jnp.tanh(c * (x + 0.044715 * x * x * x)))


def _layernorm(x, gamma, beta, eps=1e-5):
    mu = jnp.mean(x, axis=-1, keepdims=True)
    var = jnp.mean(jnp.square(x - mu), axis=-1, keepdims=True)
    return (x - mu) * jax.lax.rsqrt(var + eps) * gamma + beta


# -----------------------------------------------------------------------------
# Fused Pallas kernel: encoder layer + pooling head, one batch element per step
# -----------------------------------------------------------------------------
def _encoder_pool_kernel(x_ref, wqkv_ref, bqkv_ref, wo_ref, bo_ref,
                         g1_ref, b1_ref, wf1_ref, bf1_ref, wf2_ref, bf2_ref,
                         g2_ref, b2_ref, o_ref):
    x = x_ref[0]                       # (S, H) f32 embeddings
    s, h = x.shape
    scale = h ** -0.5

    # ---- self-attention (single head), bf16 MXU operands, f32 accumulation --
    qkv = jnp.dot(x.astype(jnp.bfloat16), wqkv_ref[...],
                  preferred_element_type=jnp.float32) + bqkv_ref[...]   # (S,3H)
    q = qkv[:, :h]
    k = qkv[:, h:2 * h]
    v = qkv[:, 2 * h:]

    scores = jax.lax.dot_general(
        q.astype(jnp.bfloat16), k.astype(jnp.bfloat16),
        dimension_numbers=(((1,), (1,)), ((), ())),
        preferred_element_type=jnp.float32) * scale                     # (S,S)
    scores = scores - jnp.max(scores, axis=-1, keepdims=True)
    p = jnp.exp(scores)
    p = p / jnp.sum(p, axis=-1, keepdims=True)

    ctx = jnp.dot(p.astype(jnp.bfloat16), v.astype(jnp.bfloat16),
                  preferred_element_type=jnp.float32)                   # (S,H)
    attn = jnp.dot(ctx.astype(jnp.bfloat16), wo_ref[...],
                   preferred_element_type=jnp.float32) + bo_ref[...]

    # ---- residual + layernorm 1 (f32) ----------------------------------------
    h1 = _layernorm(x + attn, g1_ref[...], b1_ref[...])

    # ---- feed-forward: GEMM -> GELU -> GEMM (bf16 MXU, f32 accum) ------------
    f = jnp.dot(h1.astype(jnp.bfloat16), wf1_ref[...],
                preferred_element_type=jnp.float32) + bf1_ref[...]      # (S,F)
    f = _gelu(f)
    f = jnp.dot(f.astype(jnp.bfloat16), wf2_ref[...],
                preferred_element_type=jnp.float32) + bf2_ref[...]      # (S,H)

    # ---- residual + layernorm 2 (f32) ----------------------------------------
    h2 = _layernorm(h1 + f, g2_ref[...], b2_ref[...])                   # (S,H)

    # ---- fused pooling head: [CLS | max | mean], single lane-dense store -----
    cls = h2[0:1, :]                                                    # (1,H)
    mx = jnp.max(h2, axis=0, keepdims=True)                             # (1,H)
    mn = jnp.mean(h2, axis=0, keepdims=True)                            # (1,H)
    o_ref[0] = jnp.concatenate([cls, mx, mn], axis=-1)                  # (1,3H)


# -----------------------------------------------------------------------------
# Wrapper: the SentenceEncoder forward pass
# -----------------------------------------------------------------------------
@jax.jit
def sentence_encoder_forward(token_ids, params):
    """token_ids: (N, S) int32  ->  (N, 3*H) float32 [CLS | max | mean]."""
    tok_emb = params["tok_emb"].astype(jnp.float32)
    pos_emb = params["pos_emb"].astype(jnp.float32)
    n, s = token_ids.shape
    h = tok_emb.shape[1]
    f = params["wf1"].shape[1]

    # Embedding lookup (data-dependent gather) + position embeddings: JAX glue.
    x = tok_emb[token_ids] + pos_emb[None, :s, :]                       # (N,S,H)

    r2 = lambda a: a.reshape(1, -1).astype(jnp.float32)   # biases / LN params
    bf = lambda a: a.astype(jnp.bfloat16)                  # MXU weight operands

    pooled = pl.pallas_call(
        _encoder_pool_kernel,
        out_shape=jax.ShapeDtypeStruct((n, 1, 3 * h), jnp.float32),
        grid=(n,),
        in_specs=[
            pl.BlockSpec((1, s, h), lambda b: (b, 0, 0)),      # embeddings
            pl.BlockSpec((h, 3 * h), lambda b: (0, 0)),        # wqkv (bf16)
            pl.BlockSpec((1, 3 * h), lambda b: (0, 0)),        # bqkv
            pl.BlockSpec((h, h), lambda b: (0, 0)),            # wo   (bf16)
            pl.BlockSpec((1, h), lambda b: (0, 0)),            # bo
            pl.BlockSpec((1, h), lambda b: (0, 0)),            # ln1 gamma
            pl.BlockSpec((1, h), lambda b: (0, 0)),            # ln1 beta
            pl.BlockSpec((h, f), lambda b: (0, 0)),            # wff1 (bf16)
            pl.BlockSpec((1, f), lambda b: (0, 0)),            # bff1
            pl.BlockSpec((f, h), lambda b: (0, 0)),            # wff2 (bf16)
            pl.BlockSpec((1, h), lambda b: (0, 0)),            # bff2
            pl.BlockSpec((1, h), lambda b: (0, 0)),            # ln2 gamma
            pl.BlockSpec((1, h), lambda b: (0, 0)),            # ln2 beta
        ],
        out_specs=pl.BlockSpec((1, 1, 3 * h), lambda b: (b, 0, 0)),
        compiler_params=pltpu.CompilerParams(
            dimension_semantics=("parallel",)),
    )(
        x,
        bf(params["wqkv"]), r2(params["bqkv"]),
        bf(params["wo"]), r2(params["bo"]),
        r2(params["g1"]), r2(params["b1"]),
        bf(params["wf1"]), r2(params["bf1"]),
        bf(params["wf2"]), r2(params["bf2"]),
        r2(params["g2"]), r2(params["b2"]),
    )

    # torch.cat([last_state, max_pooled, mean_pooled], dim=1) -> (N, 3H)
    return pooled.reshape(n, 3 * h)


# -----------------------------------------------------------------------------
# Pure-JAX reference (mirrors the kernel math, incl. bf16 MXU operand casts)
# -----------------------------------------------------------------------------
def _reference(token_ids, p):
    h = p["wqkv"].shape[0]
    x = p["tok_emb"].astype(jnp.float32)[token_ids] + \
        p["pos_emb"].astype(jnp.float32)[None]

    def mm(a, w):
        return jnp.einsum("...k,km->...m", a.astype(jnp.bfloat16),
                          w.astype(jnp.bfloat16),
                          preferred_element_type=jnp.float32)

    qkv = mm(x, p["wqkv"]) + p["bqkv"]
    q, k, v = qkv[..., :h], qkv[..., h:2 * h], qkv[..., 2 * h:]
    s = jnp.einsum("bqh,bkh->bqk", q.astype(jnp.bfloat16),
                   k.astype(jnp.bfloat16),
                   preferred_element_type=jnp.float32) * (h ** -0.5)
    s = s - jnp.max(s, axis=-1, keepdims=True)
    att = jnp.exp(s)
    att = att / jnp.sum(att, axis=-1, keepdims=True)
    ctx = jnp.einsum("bqk,bkh->bqh", att.astype(jnp.bfloat16),
                     v.astype(jnp.bfloat16),
                     preferred_element_type=jnp.float32)
    attn = mm(ctx, p["wo"]) + p["bo"]

    h1 = _layernorm(x + attn, p["g1"], p["b1"])
    ff = _gelu(mm(h1, p["wf1"]) + p["bf1"])
    ff = mm(ff, p["wf2"]) + p["bf2"]
    h2 = _layernorm(h1 + ff, p["g2"], p["b2"])

    return jnp.concatenate(
        [h2[:, 0, :], jnp.max(h2, axis=1), jnp.mean(h2, axis=1)], axis=1)


# -----------------------------------------------------------------------------
# Main
# -----------------------------------------------------------------------------
if __name__ == "__main__":
    # Small shapes consistent with the module's forward:
    #   sentences: (batch=2, seq=8) int token ids -> embedded: (2, 3*H)
    N, S, H, F, V = 2, 8, 128, 512, 64   # H, F, 3H all multiples of 128 lanes

    key = jax.random.PRNGKey(0)
    ks = jax.random.split(key, 16)

    def rn(k, shape, scale):
        return scale * jax.random.normal(k, shape, dtype=jnp.float32)

    token_ids = jax.random.randint(ks[0], (N, S), 0, V, dtype=jnp.int32)

    params = {
        "tok_emb": rn(ks[1], (V, H), 1.0),
        "pos_emb": rn(ks[2], (S, H), 1.0),
        "wqkv": rn(ks[3], (H, 3 * H), 0.05),
        "bqkv": rn(ks[4], (3 * H,), 0.05),
        "wo": rn(ks[5], (H, H), 0.05),
        "bo": rn(ks[6], (H,), 0.05),
        "g1": 1.0 + rn(ks[7], (H,), 0.05),
        "b1": rn(ks[8], (H,), 0.05),
        "wf1": rn(ks[9], (H, F), 0.05),
        "bf1": rn(ks[10], (F,), 0.05),
        "wf2": rn(ks[11], (F, H), 0.05),
        "bf2": rn(ks[12], (H,), 0.05),
        "g2": 1.0 + rn(ks[13], (H,), 0.05),
        "b2": rn(ks[14], (H,), 0.05),
    }

    out = jax.block_until_ready(sentence_encoder_forward(token_ids, params))
    ref = _reference(token_ids, params)

    assert out.shape == (N, 3 * H), out.shape
    err = float(jnp.max(jnp.abs(out - ref)))
    assert err < 2e-2, f"Pallas output mismatch vs reference: max abs err {err}"

    print("KERNEL_OK")
</pallas_src>

<mosaic_0001>
module attributes {stable_mosaic.version = 11 : i64} {
  func.func @_encoder_pool_kernel(%arg0: i32, %arg1: memref<1x8x128xf32, #tpu.memory_space<vmem>>, %arg2: memref<128x384xbf16, #tpu.memory_space<vmem>>, %arg3: memref<1x384xf32, #tpu.memory_space<vmem>>, %arg4: memref<128x128xbf16, #tpu.memory_space<vmem>>, %arg5: memref<1x128xf32, #tpu.memory_space<vmem>>, %arg6: memref<1x128xf32, #tpu.memory_space<vmem>>, %arg7: memref<1x128xf32, #tpu.memory_space<vmem>>, %arg8: memref<128x512xbf16, #tpu.memory_space<vmem>>, %arg9: memref<1x512xf32, #tpu.memory_space<vmem>>, %arg10: memref<512x128xbf16, #tpu.memory_space<vmem>>, %arg11: memref<1x128xf32, #tpu.memory_space<vmem>>, %arg12: memref<1x128xf32, #tpu.memory_space<vmem>>, %arg13: memref<1x128xf32, #tpu.memory_space<vmem>>, %arg14: memref<1x1x384xf32, #tpu.memory_space<vmem>>) attributes {dimension_semantics = [#tpu.dimension_semantics<parallel>], iteration_bounds = array<i64: 2>, scalar_prefetch = 0 : i64, scratch_operands = 0 : i64, tpu.core_type = #tpu.core_type<tc>, window_params = [{transform_indices = @transform_0, window_bounds = array<i64: 1, 8, 128>}, {pipeline_mode = #tpu.pipeline_mode<synchronous>, transform_indices = @transform_1, window_bounds = array<i64: 128, 384>}, {pipeline_mode = #tpu.pipeline_mode<synchronous>, transform_indices = @transform_2, window_bounds = array<i64: 1, 384>}, {pipeline_mode = #tpu.pipeline_mode<synchronous>, transform_indices = @transform_3, window_bounds = array<i64: 128, 128>}, {pipeline_mode = #tpu.pipeline_mode<synchronous>, transform_indices = @transform_4, window_bounds = array<i64: 1, 128>}, {pipeline_mode = #tpu.pipeline_mode<synchronous>, transform_indices = @transform_5, window_bounds = array<i64: 1, 128>}, {pipeline_mode = #tpu.pipeline_mode<synchronous>, transform_indices = @transform_6, window_bounds = array<i64: 1, 128>}, {pipeline_mode = #tpu.pipeline_mode<synchronous>, transform_indices = @transform_7, window_bounds = array<i64: 128, 512>}, {pipeline_mode = #tpu.pipeline_mode<synchronous>, transform_indices = @transform_8, window_bounds = array<i64: 1, 512>}, {pipeline_mode = #tpu.pipeline_mode<synchronous>, transform_indices = @transform_9, window_bounds = array<i64: 512, 128>}, {pipeline_mode = #tpu.pipeline_mode<synchronous>, transform_indices = @transform_10, window_bounds = array<i64: 1, 128>}, {pipeline_mode = #tpu.pipeline_mode<synchronous>, transform_indices = @transform_11, window_bounds = array<i64: 1, 128>}, {pipeline_mode = #tpu.pipeline_mode<synchronous>, transform_indices = @transform_12, window_bounds = array<i64: 1, 128>}, {transform_indices = @transform_13, window_bounds = array<i64: 1, 1, 384>}]} {
    %c0 = arith.constant 0 : index
    %c0_0 = arith.constant 0 : index
    %c0_1 = arith.constant 0 : index
    %0 = vector.load %arg1[%c0, %c0_0, %c0_1] : memref<1x8x128xf32, #tpu.memory_space<vmem>>, vector<1x8x128xf32>
    %1 = vector.shape_cast %0 : vector<1x8x128xf32> to vector<8x128xf32>
    %2 = arith.truncf %1 : vector<8x128xf32> to vector<8x128xbf16>
    %c0_2 = arith.constant 0 : index
    %c0_3 = arith.constant 0 : index
    %3 = vector.load %arg2[%c0_2, %c0_3] : memref<128x384xbf16, #tpu.memory_space<vmem>>, vector<128x384xbf16>
    %cst = arith.constant dense<0.000000e+00> : vector<8x384xf32>
    %4 = tpu.matmul %2, %3, %cst {dimension_numbers = #tpu.dot_dimension_numbers<[1], [0], [0], [1], [0, 0, 1, 1], [], []>} : vector<8x128xbf16>, vector<128x384xbf16>, vector<8x384xf32> -> vector<8x384xf32>
    %c0_4 = arith.constant 0 : index
    %c0_5 = arith.constant 0 : index
    %5 = vector.load %arg3[%c0_4, %c0_5] : memref<1x384xf32, #tpu.memory_space<vmem>>, vector<1x384xf32>
    %6 = vector.broadcast %5 : vector<1x384xf32> to vector<8x384xf32>
    %7 = arith.addf %4, %6 : vector<8x384xf32>
    %8 = vector.extract_strided_slice %7 {offsets = [0, 0], sizes = [8, 128], strides = [1, 1]} : vector<8x384xf32> to vector<8x128xf32>
    %9 = vector.extract_strided_slice %7 {offsets = [0, 128], sizes = [8, 128], strides = [1, 1]} : vector<8x384xf32> to vector<8x128xf32>
    %10 = vector.extract_strided_slice %7 {offsets = [0, 256], sizes = [8, 128], strides = [1, 1]} : vector<8x384xf32> to vector<8x128xf32>
    %11 = arith.truncf %8 : vector<8x128xf32> to vector<8x128xbf16>
    %12 = arith.truncf %9 : vector<8x128xf32> to vector<8x128xbf16>
    %cst_6 = arith.constant dense<0.000000e+00> : vector<8x8xf32>
    %13 = tpu.matmul %11, %12, %cst_6 {dimension_numbers = #tpu.dot_dimension_numbers<[1], [1], [0], [0], [0, 0, 1, 0], [], []>} : vector<8x128xbf16>, vector<8x128xbf16>, vector<8x8xf32> -> vector<8x8xf32>
    %cst_7 = arith.constant 0.0883883461 : f32
    %14 = vector.broadcast %cst_7 : f32 to vector<8x8xf32>
    %15 = arith.mulf %13, %14 : vector<8x8xf32>
    %cst_8 = arith.constant dense<0xFF800000> : vector<8xf32>
    %16 = vector.multi_reduction <maximumf>, %15, %cst_8 [1] : vector<8x8xf32> to vector<8xf32>
    %17 = vector.shape_cast %16 : vector<8xf32> to vector<8x1xf32>
    %18 = vector.broadcast %17 : vector<8x1xf32> to vector<8x8xf32>
    %19 = arith.subf %15, %18 : vector<8x8xf32>
    %20 = math.exp %19 : vector<8x8xf32>
    %cst_9 = arith.constant dense<0.000000e+00> : vector<8xf32>
    %21 = vector.multi_reduction <add>, %20, %cst_9 [1] : vector<8x8xf32> to vector<8xf32>
    %22 = vector.shape_cast %21 : vector<8xf32> to vector<8x1xf32>
    %23 = vector.broadcast %22 : vector<8x1xf32> to vector<8x8xf32>
    %24 = arith.divf %20, %23 : vector<8x8xf32>
    %25 = arith.truncf %24 : vector<8x8xf32> to vector<8x8xbf16>
    %26 = arith.truncf %10 : vector<8x128xf32> to vector<8x128xbf16>
    %cst_10 = arith.constant dense<0.000000e+00> : vector<8x128xf32>
    %27 = tpu.matmul %25, %26, %cst_10 {dimension_numbers = #tpu.dot_dimension_numbers<[1], [0], [0], [1], [0, 0, 1, 1], [], []>} : vector<8x8xbf16>, vector<8x128xbf16>, vector<8x128xf32> -> vector<8x128xf32>
    %28 = arith.truncf %27 : vector<8x128xf32> to vector<8x128xbf16>
    %c0_11 = arith.constant 0 : index
    %c0_12 = arith.constant 0 : index
    %29 = vector.load %arg4[%c0_11, %c0_12] : memref<128x128xbf16, #tpu.memory_space<vmem>>, vector<128x128xbf16>
    %cst_13 = arith.constant dense<0.000000e+00> : vector<8x128xf32>
    %30 = tpu.matmul %28, %29, %cst_13 {dimension_numbers = #tpu.dot_dimension_numbers<[1], [0], [0], [1], [0, 0, 1, 1], [], []>} : vector<8x128xbf16>, vector<128x128xbf16>, vector<8x128xf32> -> vector<8x128xf32>
    %c0_14 = arith.constant 0 : index
    %c0_15 = arith.constant 0 : index
    %31 = vector.load %arg5[%c0_14, %c0_15] : memref<1x128xf32, #tpu.memory_space<vmem>>, vector<1x128xf32>
    %32 = vector.broadcast %31 : vector<1x128xf32> to vector<8x128xf32>
    %33 = arith.addf %30, %32 : vector<8x128xf32>
    %34 = arith.addf %1, %33 : vector<8x128xf32>
    %c0_16 = arith.constant 0 : index
    %c0_17 = arith.constant 0 : index
    %35 = vector.load %arg6[%c0_16, %c0_17] : memref<1x128xf32, #tpu.memory_space<vmem>>, vector<1x128xf32>
    %c0_18 = arith.constant 0 : index
    %c0_19 = arith.constant 0 : index
    %36 = vector.load %arg7[%c0_18, %c0_19] : memref<1x128xf32, #tpu.memory_space<vmem>>, vector<1x128xf32>
    %cst_20 = arith.constant dense<0.000000e+00> : vector<8xf32>
    %37 = vector.multi_reduction <add>, %34, %cst_20 [1] : vector<8x128xf32> to vector<8xf32>
    %38 = vector.shape_cast %37 : vector<8xf32> to vector<8x1xf32>
    %cst_21 = arith.constant 1.280000e+02 : f32
    %39 = vector.broadcast %cst_21 : f32 to vector<8x1xf32>
    %40 = arith.divf %38, %39 : vector<8x1xf32>
    %41 = vector.broadcast %40 : vector<8x1xf32> to vector<8x128xf32>
    %42 = arith.subf %34, %41 : vector<8x128xf32>
    %43 = arith.mulf %42, %42 : vector<8x128xf32>
    %cst_22 = arith.constant dense<0.000000e+00> : vector<8xf32>
    %44 = vector.multi_reduction <add>, %43, %cst_22 [1] : vector<8x128xf32> to vector<8xf32>
    %45 = vector.shape_cast %44 : vector<8xf32> to vector<8x1xf32>
    %cst_23 = arith.constant 1.280000e+02 : f32
    %46 = vector.broadcast %cst_23 : f32 to vector<8x1xf32>
    %47 = arith.divf %45, %46 : vector<8x1xf32>
    %48 = vector.broadcast %40 : vector<8x1xf32> to vector<8x128xf32>
    %49 = arith.subf %34, %48 : vector<8x128xf32>
    %cst_24 = arith.constant 9.99999974E-6 : f32
    %50 = vector.broadcast %cst_24 : f32 to vector<8x1xf32>
    %51 = arith.addf %47, %50 : vector<8x1xf32>
    %52 = math.rsqrt %51 : vector<8x1xf32>
    %53 = vector.broadcast %52 : vector<8x1xf32> to vector<8x128xf32>
    %54 = arith.mulf %49, %53 : vector<8x128xf32>
    %55 = vector.broadcast %35 : vector<1x128xf32> to vector<8x128xf32>
    %56 = arith.mulf %54, %55 : vector<8x128xf32>
    %57 = vector.broadcast %36 : vector<1x128xf32> to vector<8x128xf32>
    %58 = arith.addf %56, %57 : vector<8x128xf32>
    %59 = arith.truncf %58 : vector<8x128xf32> to vector<8x128xbf16>
    %c0_25 = arith.constant 0 : index
    %c0_26 = arith.constant 0 : index
    %60 = vector.load %arg8[%c0_25, %c0_26] : memref<128x512xbf16, #tpu.memory_space<vmem>>, vector<128x512xbf16>
    %cst_27 = arith.constant dense<0.000000e+00> : vector<8x512xf32>
    %61 = tpu.matmul %59, %60, %cst_27 {dimension_numbers = #tpu.dot_dimension_numbers<[1], [0], [0], [1], [0, 0, 1, 1], [], []>} : vector<8x128xbf16>, vector<128x512xbf16>, vector<8x512xf32> -> vector<8x512xf32>
    %c0_28 = arith.constant 0 : index
    %c0_29 = arith.constant 0 : index
    %62 = vector.load %arg9[%c0_28, %c0_29] : memref<1x512xf32, #tpu.memory_space<vmem>>, vector<1x512xf32>
    %63 = vector.broadcast %62 : vector<1x512xf32> to vector<8x512xf32>
    %64 = arith.addf %61, %63 : vector<8x512xf32>
    %cst_30 = arith.constant 5.000000e-01 : f32
    %65 = vector.broadcast %cst_30 : f32 to vector<8x512xf32>
    %66 = arith.mulf %65, %64 : vector<8x512xf32>
    %cst_31 = arith.constant 4.471500e-02 : f32
    %67 = vector.broadcast %cst_31 : f32 to vector<8x512xf32>
    %68 = arith.mulf %67, %64 : vector<8x512xf32>
    %69 = arith.mulf %68, %64 : vector<8x512xf32>
    %70 = arith.mulf %69, %64 : vector<8x512xf32>
    %71 = arith.addf %64, %70 : vector<8x512xf32>
    %cst_32 = arith.constant 0.797884583 : f32
    %72 = vector.broadcast %cst_32 : f32 to vector<8x512xf32>
    %73 = arith.mulf %72, %71 : vector<8x512xf32>
    %74 = math.tanh %73 : vector<8x512xf32>
    %cst_33 = arith.constant 1.000000e+00 : f32
    %75 = vector.broadcast %cst_33 : f32 to vector<8x512xf32>
    %76 = arith.addf %75, %74 : vector<8x512xf32>
    %77 = arith.mulf %66, %76 : vector<8x512xf32>
    %78 = arith.truncf %77 : vector<8x512xf32> to vector<8x512xbf16>
    %c0_34 = arith.constant 0 : index
    %c0_35 = arith.constant 0 : index
    %79 = vector.load %arg10[%c0_34, %c0_35] : memref<512x128xbf16, #tpu.memory_space<vmem>>, vector<512x128xbf16>
    %cst_36 = arith.constant dense<0.000000e+00> : vector<8x128xf32>
    %80 = tpu.matmul %78, %79, %cst_36 {dimension_numbers = #tpu.dot_dimension_numbers<[1], [0], [0], [1], [0, 0, 1, 1], [], []>} : vector<8x512xbf16>, vector<512x128xbf16>, vector<8x128xf32> -> vector<8x128xf32>
    %c0_37 = arith.constant 0 : index
    %c0_38 = arith.constant 0 : index
    %81 = vector.load %arg11[%c0_37, %c0_38] : memref<1x128xf32, #tpu.memory_space<vmem>>, vector<1x128xf32>
    %82 = vector.broadcast %81 : vector<1x128xf32> to vector<8x128xf32>
    %83 = arith.addf %80, %82 : vector<8x128xf32>
    %84 = arith.addf %58, %83 : vector<8x128xf32>
    %c0_39 = arith.constant 0 : index
    %c0_40 = arith.constant 0 : index
    %85 = vector.load %arg12[%c0_39, %c0_40] : memref<1x128xf32, #tpu.memory_space<vmem>>, vector<1x128xf32>
    %c0_41 = arith.constant 0 : index
    %c0_42 = arith.constant 0 : index
    %86 = vector.load %arg13[%c0_41, %c0_42] : memref<1x128xf32, #tpu.memory_space<vmem>>, vector<1x128xf32>
    %cst_43 = arith.constant dense<0.000000e+00> : vector<8xf32>
    %87 = vector.multi_reduction <add>, %84, %cst_43 [1] : vector<8x128xf32> to vector<8xf32>
    %88 = vector.shape_cast %87 : vector<8xf32> to vector<8x1xf32>
    %cst_44 = arith.constant 1.280000e+02 : f32
    %89 = vector.broadcast %cst_44 : f32 to vector<8x1xf32>
    %90 = arith.divf %88, %89 : vector<8x1xf32>
    %91 = vector.broadcast %90 : vector<8x1xf32> to vector<8x128xf32>
    %92 = arith.subf %84, %91 : vector<8x128xf32>
    %93 = arith.mulf %92, %92 : vector<8x128xf32>
    %cst_45 = arith.constant dense<0.000000e+00> : vector<8xf32>
    %94 = vector.multi_reduction <add>, %93, %cst_45 [1] : vector<8x128xf32> to vector<8xf32>
    %95 = vector.shape_cast %94 : vector<8xf32> to vector<8x1xf32>
    %cst_46 = arith.constant 1.280000e+02 : f32
    %96 = vector.broadcast %cst_46 : f32 to vector<8x1xf32>
    %97 = arith.divf %95, %96 : vector<8x1xf32>
    %98 = vector.broadcast %90 : vector<8x1xf32> to vector<8x128xf32>
    %99 = arith.subf %84, %98 : vector<8x128xf32>
    %cst_47 = arith.constant 9.99999974E-6 : f32
    %100 = vector.broadcast %cst_47 : f32 to vector<8x1xf32>
    %101 = arith.addf %97, %100 : vector<8x1xf32>
    %102 = math.rsqrt %101 : vector<8x1xf32>
    %103 = vector.broadcast %102 : vector<8x1xf32> to vector<8x128xf32>
    %104 = arith.mulf %99, %103 : vector<8x128xf32>
    %105 = vector.broadcast %85 : vector<1x128xf32> to vector<8x128xf32>
    %106 = arith.mulf %104, %105 : vector<8x128xf32>
    %107 = vector.broadcast %86 : vector<1x128xf32> to vector<8x128xf32>
    %108 = arith.addf %106, %107 : vector<8x128xf32>
    %109 = vector.extract_strided_slice %108 {offsets = [0, 0], sizes = [1, 128], strides = [1, 1]} : vector<8x128xf32> to vector<1x128xf32>
    %cst_48 = arith.constant dense<0xFF800000> : vector<128xf32>
    %110 = vector.multi_reduction <maximumf>, %108, %cst_48 [0] : vector<8x128xf32> to vector<128xf32>
    %111 = vector.shape_cast %110 : vector<128xf32> to vector<1x128xf32>
    %cst_49 = arith.constant dense<0.000000e+00> : vector<128xf32>
    %112 = vector.multi_reduction <add>, %108, %cst_49 [0] : vector<8x128xf32> to vector<128xf32>
    %113 = vector.shape_cast %112 : vector<128xf32> to vector<1x128xf32>
    %cst_50 = arith.constant 8.000000e+00 : f32
    %114 = vector.broadcast %cst_50 : f32 to vector<1x128xf32>
    %115 = arith.divf %113, %114 : vector<1x128xf32>
    %116 = tpu.concatenate %109, %111, %115 in 1 : vector<1x128xf32>, vector<1x128xf32>, vector<1x128xf32> -> vector<1x384xf32>
    %c0_51 = arith.constant 0 : index
    %c0_52 = arith.constant 0 : index
    %c0_53 = arith.constant 0 : index
    %117 = vector.load %arg14[%c0_51, %c0_52, %c0_53] : memref<1x1x384xf32, #tpu.memory_space<vmem>>, vector<1x1x384xf32>
    %118 = vector.shape_cast %117 : vector<1x1x384xf32> to vector<1x384xf32>
    %119 = vector.shape_cast %116 : vector<1x384xf32> to vector<1x1x384xf32>
    tpu.vector_store %arg14[%c0_51, %c0_52, %c0_53], %119 {strides = array<i32>} : memref<1x1x384xf32, #tpu.memory_space<vmem>>, vector<1x1x384xf32>,
    return
  }
  func.func @transform_0(%arg0: i32) -> (i32, i32, i32) {
    %c0_i32 = arith.constant 0 : i32
    %c0_i32_0 = arith.constant 0 : i32
    %c0_i32_1 = arith.constant 0 : i32
    return %arg0, %c0_i32, %c0_i32_0 : i32, i32, i32
  }
  func.func @transform_1(%arg0: i32) -> (i32, i32) {
    %c0_i32 = arith.constant 0 : i32
    %c0_i32_0 = arith.constant 0 : i32
    %c0_i32_1 = arith.constant 0 : i32
    return %c0_i32, %c0_i32_0 : i32, i32
  }
  func.func @transform_2(%arg0: i32) -> (i32, i32) {
    %c0_i32 = arith.constant 0 : i32
    %c0_i32_0 = arith.constant 0 : i32
    %c0_i32_1 = arith.constant 0 : i32
    return %c0_i32, %c0_i32_0 : i32, i32
  }
  func.func @transform_3(%arg0: i32) -> (i32, i32) {
    %c0_i32 = arith.constant 0 : i32
    %c0_i32_0 = arith.constant 0 : i32
    %c0_i32_1 = arith.constant 0 : i32
    return %c0_i32, %c0_i32_0 : i32, i32
  }
  func.func @transform_4(%arg0: i32) -> (i32, i32) {
    %c0_i32 = arith.constant 0 : i32
    %c0_i32_0 = arith.constant 0 : i32
    %c0_i32_1 = arith.constant 0 : i32
    return %c0_i32, %c0_i32_0 : i32, i32
  }
  func.func @transform_5(%arg0: i32) -> (i32, i32) {
    %c0_i32 = arith.constant 0 : i32
    %c0_i32_0 = arith.constant 0 : i32
    %c0_i32_1 = arith.constant 0 : i32
    return %c0_i32, %c0_i32_0 : i32, i32
  }
  func.func @transform_6(%arg0: i32) -> (i32, i32) {
    %c0_i32 = arith.constant 0 : i32
    %c0_i32_0 = arith.constant 0 : i32
    %c0_i32_1 = arith.constant 0 : i32
    return %c0_i32, %c0_i32_0 : i32, i32
  }
  func.func @transform_7(%arg0: i32) -> (i32, i32) {
    %c0_i32 = arith.constant 0 : i32
    %c0_i32_0 = arith.constant 0 : i32
    %c0_i32_1 = arith.constant 0 : i32
    return %c0_i32, %c0_i32_0 : i32, i32
  }
  func.func @transform_8(%arg0: i32) -> (i32, i32) {
    %c0_i32 = arith.constant 0 : i32
    %c0_i32_0 = arith.constant 0 : i32
    %c0_i32_1 = arith.constant 0 : i32
    return %c0_i32, %c0_i32_0 : i32, i32
  }
  func.func @transform_9(%arg0: i32) -> (i32, i32) {
    %c0_i32 = arith.constant 0 : i32
    %c0_i32_0 = arith.constant 0 : i32
    %c0_i32_1 = arith.constant 0 : i32
    return %c0_i32, %c0_i32_0 : i32, i32
  }
  func.func @transform_10(%arg0: i32) -> (i32, i32) {
    %c0_i32 = arith.constant 0 : i32
    %c0_i32_0 = arith.constant 0 : i32
    %c0_i32_1 = arith.constant 0 : i32
    return %c0_i32, %c0_i32_0 : i32, i32
  }
  func.func @transform_11(%arg0: i32) -> (i32, i32) {
    %c0_i32 = arith.constant 0 : i32
    %c0_i32_0 = arith.constant 0 : i32
    %c0_i32_1 = arith.constant 0 : i32
    return %c0_i32, %c0_i32_0 : i32, i32
  }
  func.func @transform_12(%arg0: i32) -> (i32, i32) {
    %c0_i32 = arith.constant 0 : i32
    %c0_i32_0 = arith.constant 0 : i32
    %c0_i32_1 = arith.constant 0 : i32
    return %c0_i32, %c0_i32_0 : i32, i32
  }
  func.func @transform_13(%arg0: i32) -> (i32, i32, i32) {
    %c0_i32 = arith.constant 0 : i32
    %c0_i32_0 = arith.constant 0 : i32
    %c0_i32_1 = arith.constant 0 : i32
    return %arg0, %c0_i32, %c0_i32_0 : i32, i32, i32
  }
}

</mosaic_0001>

<bundles_post_ra>
// kernel: sentence_encoder_forward.1
= control target key start
LH: loop header
LB: loop body
LE: loop exit
PB: predicated region body
PF: predicated region fallthrough
CT: control target
= control target key end

     0   :  { %s2209_s25 = smov 0   ;;  %s2605_s0 = inlined_call_operand.vmem [shape: f32[2,8,128], index: 0, kind: input, shape index: {}]   ;;  %s2606_s1 = inlined_call_operand.vmem [shape: bf16[128,384], index: 1, kind: input, shape index: {}]   ;;  %s2607_s2 = inlined_call_operand.vmem [shape: f32[1,384], index: 2, kind: input, shape index: {}]   ;;  %s2608_s3 = inlined_call_operand.vmem [shape: bf16[128,128], index: 3, kind: input, shape index: {}]   ;;  %s2609_s4 = inlined_call_operand.vmem [shape: f32[1,128], index: 4, kind: input, shape index: {}]   ;;  %s2610_s5 = inlined_call_operand.vmem [shape: f32[1,128], index: 5, kind: input, shape index: {}]   ;;  %s2611_s6 = inlined_call_operand.vmem [shape: f32[1,128], index: 6, kind: input, shape index: {}]   ;;  %s2612_s7 = inlined_call_operand.vmem [shape: bf16[128,512], index: 7, kind: input, shape index: {}]   ;;  %s2613_s8 = inlined_call_operand.vmem [shape: f32[1,512], index: 8, kind: input, shape index: {}]   ;;  %s2614_s9 = inlined_call_operand.vmem [shape: bf16[512,128], index: 9, kind: input, shape index: {}]   ;;  %s2615_s10 = inlined_call_operand.vmem [shape: f32[1,128], index: 10, kind: input, shape index: {}]   ;;  %s2616_s11 = inlined_call_operand.vmem [shape: f32[1,128], index: 11, kind: input, shape index: {}]   ;;  %s2617_s12 = inlined_call_operand.vmem [shape: f32[1,128], index: 12, kind: input, shape index: {}]   ;;  %s2618_s13 = inlined_call_operand.vmem [shape: f32[2,1,384], index: 13, kind: output, shape index: {}]  }
   0x1 LB: > { %s1749_s26 = sadd.s32 4294967295, %s2133_s25   ;;  %p1753_p0 = scmp.ge.s32.totalorder %s2133_s25, 1  ;;  %s2133_s25 = sphi %s2209_s25, %s23_s25  }
   0x2   : > { %p386_p1 = scmp.lt.s32.totalorder %s2133_s25, 3 }
   0x4   : > { %p387_p2 = pnand %p1753_p0, %p386_p1 }
   0x5   : > { %p428_p3 = scmp.lt.s32.totalorder (!%p387_p2), %s1749_s26, 1 }
   0x6   : > { %390 = sbr.rel (%p387_p2) target bundleno = 2217 (0x8a9), region = 72 }
   0xb   : > { %v1991_v0 = vld [vmem:[%s2606_s1 + $0xac] ss:$12 sps:$4 sm:$0xff]   ;;  %v1993_v1 = vld [vmem:[%s2606_s1 + $0xa8] ss:$12 sps:$4 sm:$0xff]   ;;  %v2135_v2 = vmov 0   ;;  %v2136_v4 = vmov 0.0   ;;  %v473_v28 = vlaneseq }
   0xc   : > { %648 = vmatprep.mubr.bf16.mxu0 %v2135_v2  ;;  %616 = vmatprep.subr.bf16.mxu0 %v1991_v0  ;;  %v1994_v3 = vld [vmem:[%s2606_s1 + $0x94] ss:$12 sps:$4 sm:$0xff]   ;;  %v1996_v5 = vld [vmem:[%s2606_s1 + $0x90] ss:$12 sps:$4 sm:$0xff]   ;;  %v1999_v7 = vld [vmem:[%s2606_s1 + $0x78] ss:$12 sps:$4 sm:$0xff]  }
   0xd   : > { %1926 = vmatprep.subr.bf16.mxu1 %v2136_v4  ;;  %617 = vmatpush1.bf16.msra.mxu0 %v1993_v1  ;;  %v1997_v6 = vld [vmem:[%s2606_s1 + $0x7c] ss:$12 sps:$4 sm:$0xff]   ;;  %v2000_v8 = vld [vmem:[%s2606_s1 + $0x64] ss:$12 sps:$4 sm:$0xff]   ;;  %v2002_v9 = vld [vmem:[%s2606_s1 + $0x60] ss:$12 sps:$4 sm:$0xff]  }
   0xe   : > { %618 = vmatprep.subr.bf16.mxu0 %v1994_v3  ;;  %s2620_s26 = smov (!%p428_p3, %s1749_s26), 1  ;;  %v2015_v10 = vld [vmem:[%s2606_s1 + $0xb0] ss:$12 sps:$4 sm:$0xff]   ;;  %v2003_v11 = vld [vmem:[%s2606_s1 + $0x4c] ss:$12 sps:$4 sm:$0xff]   ;;  %vm2137_vm0 = vmmov 0  }
   0xf   : > { %1927 = vmatpush3.bf16.msra.mxu1 %v2015_v10  ;;  %v2016_v12 = vld [vmem:[%s2606_s1 + $0x98] ss:$12 sps:$4 sm:$0xff]   ;;  %s1754_s17 = sshll.u32 %s2620_s26, 3  ;;  %v2005_v13 = vld [vmem:[%s2606_s1 + $0x48] ss:$12 sps:$4 sm:$0xff]   ;;  %1942 = vmatprep.mubr.msk.bf16.mxu1 %vm2137_vm0, %v2136_v4  ;;  %v2317_v29 = vshrl.u32 %v473_v28, 7 }
  0x10   : > { %1928 = vmatprep.subr.bf16.mxu1 %v2136_v4  ;;  %v2006_v14 = vld [vmem:[%s2606_s1 + $0x34] ss:$12 sps:$4 sm:$0xff]   ;;  %v2008_v15 = vld [vmem:[%s2606_s1 + $0x30] ss:$12 sps:$4 sm:$0xff]   ;;  %v2011_v19 = vld [vmem:[%s2606_s1 + $0x18] ss:$12 sps:$4 sm:$0xff]   ;;  %s431_s22 = scalar_lea.vmem %s2605_s0, %s1754_s17 }
  0x11   : > { %619 = vmatpush1.bf16.msra.mxu0 %v1996_v5  ;;  %v2017_v16 = vld [vmem:[%s2606_s1 + $0x80] ss:$12 sps:$4 sm:$0xff]   ;;  %v2009_v17 = vld [vmem:[%s2606_s1 + $0x1c] ss:$12 sps:$4 sm:$0xff]   ;;  %v2012_v20 = vld [vmem:[%s2606_s1 + $0x4] ss:$12 sps:$4 sm:$0xff]  }
  0x12   : > { %620 = vmatprep.subr.bf16.mxu0 %v1997_v6  ;;  %v2018_v18 = vld [vmem:[%s2606_s1 + $0x68] ss:$12 sps:$4 sm:$0xff]   ;;  %v2019_v21 = vld [vmem:[%s2606_s1 + $0x50] ss:$12 sps:$4 sm:$0xff]   ;;  %v2014_v22 = vld [vmem:[%s2606_s1] ss:$12 sps:$4 sm:$0xff]  }
  0x13   : > { %1929 = vmatpush3.bf16.msra.mxu1 %v2016_v12  ;;  %v2291_v23 = vld [vmem:[%s431_s22] sm:$0xff]  ;;  %v2022_v27 = vld [vmem:[%s2606_s1 + $0x8] ss:$12 sps:$4 sm:$0xff]   ;;  %v479_v30 = vsub.s32 1, %v2317_v29  ;;  %v475_v33 = vsub.s32 0, %v2317_v29  ;;  %v483_v43 = vsub.s32 2, %v2317_v29 }
  0x14   : > { %1930 = vmatprep.subr.bf16.mxu1 %v2136_v4  ;;  %v2020_v24 = vld [vmem:[%s2606_s1 + $0x38] ss:$12 sps:$4 sm:$0xff]   ;;  %v438_v25 = vpack.c.bf16 %v2291_v23, %v2291_v23  ;;  %v2021_v26 = vld [vmem:[%s2606_s1 + $0x20] ss:$12 sps:$4 sm:$0xff]   ;;  %vm757_vm1 = vcmask 1043456   ;;  %vm740_vm2 = vcmask 64512  }
  0x15   : > { %621 = vmatpush1.bf16.msra.mxu0 %v1999_v7  ;;  %v471_v31 = vld [vmem:[%s2607_s2] sm:$0x7]  ;;  %v2023_v63 = vld [vmem:[%s2608_s3 + $0x38] sm:$0xff]   ;;  %v2024_v0 = vld [vmem:[%s2608_s3 + $0x30] sm:$0xff]   ;;  %s1978_s17 = smul.u32 3, %s2620_s26  ;;  %vm1693_vm3 = vcmp.lt.s32.totalorder %v473_v28, 384 }
  0x16   : > { %622 = vmatprep.subr.bf16.mxu0 %v2000_v8  ;;  %v480_v32 = vrot.slane %v471_v31, %v479_v30  ;;  %v476_v37 = vrot.slane %v471_v31, %v475_v33  ;;  %v484_v44 = vrot.slane %v471_v31, %v483_v43  ;;  %v2025_v1 = vld [vmem:[%s2608_s3 + $0x28] sm:$0xff]   ;;  %v2026_v3 = vld [vmem:[%s2608_s3 + $0x20] sm:$0xff]   ;;  %v2027_v5 = vld [vmem:[%s2608_s3 + $0x18] sm:$0xff]  }
  0x17   : > { %1931 = vmatpush3.bf16.msra.mxu1 %v2017_v16  ;;  %v2028_v6 = vld [vmem:[%s2608_s3 + $0x10] sm:$0xff]   ;;  %v2029_v7 = vld [vmem:[%s2608_s3 + $0x8] sm:$0xff]   ;;  %v2030_v12 = vld [vmem:[%s2608_s3] sm:$0xff]   ;;  %s435_s15 = scalar_lea.vmem %s2618_s13, %s1978_s17 }
  0x18   : > { %1932 = vmatprep.subr.bf16.mxu1 %v2136_v4  ;;  %v2042_v31 = vld [vmem:[%s2612_s7 + $0xcc] ss:$16 sps:$4 sm:$0xff]  }
  0x19   : > { %623 = vmatpush1.bf16.msra.mxu0 %v2002_v9 }
  0x1a   : > { %624 = vmatprep.subr.bf16.mxu0 %v2003_v11 }
  0x1b   : > { %1933 = vmatpush3.bf16.msra.mxu1 %v2018_v18 }
  0x1c   : > { %1934 = vmatprep.subr.bf16.mxu1 %v2136_v4 }
  0x1d   : > { %625 = vmatpush1.bf16.msra.mxu0 %v2005_v13 }
  0x1e   : > { %626 = vmatprep.subr.bf16.mxu0 %v2006_v14 }
  0x1f   : > { %1935 = vmatpush3.bf16.msra.mxu1 %v2019_v21 }
  0x20   : > { %1936 = vmatprep.subr.bf16.mxu1 %v2136_v4 }
  0x21   : > { %627 = vmatpush1.bf16.msra.mxu0 %v2008_v15 }
  0x22   : > { %628 = vmatprep.subr.bf16.mxu0 %v2009_v17  ;;  %v1780_v17 = vld [vmem:[%s2609_s4] ss:$0 sm:$0xff] }
  0x23   : > { %1937 = vmatpush3.bf16.msra.mxu1 %v2020_v24 }
  0x24   : > { %1938 = vmatprep.subr.bf16.mxu1 %v2136_v4 }
  0x25   : > { %629 = vmatpush1.bf16.msra.mxu0 %v2011_v19 }
  0x26   : > { %630 = vmatprep.subr.bf16.mxu0 %v2012_v20 }
  0x27   : > { %1939 = vmatpush3.bf16.msra.mxu1 %v2021_v26  ;;  %v2034_v26 = vld [vmem:[%s2612_s7 + $0xe8] ss:$16 sps:$4 sm:$0xff]  }
  0x28   : > { %1940 = vmatprep.subr.bf16.mxu1 %v2136_v4 }
  0x29   : > { %631 = vmatpush1.bf16.msra.mxu0 %v2014_v22 }
  0x2a   : > { %1958 = vmatprep.subr.bf16.mxu0 %v2136_v4 }
  0x2b   : > { %1941 = vmatpush3.bf16.msra.mxu1 %v2022_v27  ;;  %v2036_v27 = vld [vmem:[%s2612_s7 + $0xec] ss:$16 sps:$4 sm:$0xff]  }
  0x2c   : > { %649 = vmatmul.mubr.bf16.vlgmr.msra.gmra.mxu0 %v438_v25  ;;  %1946 = vmatprep.subr.bf16.mxu1 %v2136_v4 }
  0x2d   : > { %1974 = vmatprep.mubr.msk.bf16.mxu0 %vm2137_vm0, %v2136_v4  ;;  %1959 = vmatpush3.bf16.msra.mxu0 %v2023_v63  ;;  %v2076_v63 = vld [vmem:[%s2612_s7 + $0x8] ss:$16 sps:$4 sm:$0xff]  }
  0x2e   : > { %1943 = vmatmul.mubr.bf16.vlgmr.msra.gmra.mxu1 %v438_v25  ;;  %1960 = vmatprep.subr.bf16.mxu0 %v2136_v4  ;;  %v2031_v25 = vld [vmem:[%s2612_s7 + $0xe0] ss:$16 sps:$4 sm:$0xff]  }
  0x2f   : > { %1948 = vmatprep.mubr.msk.bf16.mxu1 %vm2137_vm0, %v2136_v4 }
  0x31   : > { %1961 = vmatpush3.bf16.msra.mxu0 %v2024_v0 }
  0x32   : > { %1962 = vmatprep.subr.bf16.mxu0 %v2136_v4 }
  0x35   : > { %1963 = vmatpush3.bf16.msra.mxu0 %v2025_v1 }
  0x36   : > { %1964 = vmatprep.subr.bf16.mxu0 %v2136_v4 }
  0x39   : > { %1965 = vmatpush3.bf16.msra.mxu0 %v2026_v3 }
  0x3a   : > { %1966 = vmatprep.subr.bf16.mxu0 %v2136_v4 }
  0x3d   : > { %1967 = vmatpush3.bf16.msra.mxu0 %v2027_v5 }
  0x3e   : > { %1968 = vmatprep.subr.bf16.mxu0 %v2136_v4 }
  0x41   : > { %1969 = vmatpush3.bf16.msra.mxu0 %v2028_v6  ;;  %v1789_v6 = vld [vmem:[%s2610_s5] ss:$0 sm:$0xff] }
  0x42   : > { %1970 = vmatprep.subr.bf16.mxu0 %v2136_v4 }
  0x45   : > { %1971 = vmatpush3.bf16.msra.mxu0 %v2029_v7 }
  0x46   : > { %1972 = vmatprep.subr.bf16.mxu0 %v2136_v4 }
  0x49   : > { %1973 = vmatpush3.bf16.msra.mxu0 %v2030_v12  ;;  %v2079_v12 = vld [vmem:[%s2614_s9 + $0x78] sm:$0xff]  }
  0x4a   : > { %1198 = vmatprep.subr.bf16.mxu0 %v2036_v27  ;;  %v2095_v27 = vld [vmem:[%s2614_s9 + $0x58] sm:$0xff]  }
  0xec   : > { %v650_v34 = vpop.f32.mrf.mxu0 }
  0xed   : > { %v651_v41 = vadd.f32 %v650_v34, %v476_v37  ;;  %v2040_v34 = vld [vmem:[%s2612_s7 + $0xc8] ss:$16 sps:$4 sm:$0xff]  }
  0xee   : > { %v652_v35 = vpop.f32.mrf.mxu0  ;;  %v691_v45 = vpop.f32.mrf.mxu1 }
  0xef   : > { %v653_v36 = vadd.f32 %v652_v35, %v480_v32  ;;  %v697_v42 = vpack.c.bf16 %v651_v41, %v651_v41  ;;  %v692_v46 = vadd.f32 %v691_v45, %v484_v44  ;;  %v2037_v32 = vld [vmem:[%s2612_s7 + $0xc0] ss:$16 sps:$4 sm:$0xff]   ;;  %v2051_v45 = vld [vmem:[%s2612_s7 + $0x84] ss:$16 sps:$4 sm:$0xff]  }
  0xf0   : > { %v654_v38 = vpop.f32.mrf.mxu0  ;;  %v1944_v47 = vpop.f32.mrf.mxu1  ;;  %v2043_v41 = vld [vmem:[%s2612_s7 + $0xa0] ss:$16 sps:$4 sm:$0xff]  }
  0xf1   : > { %v698_v39 = vpack.c.bf16 %v653_v36, %v653_v36  ;;  %v753_v48 = vpack.c.bf16 %v692_v46, %v692_v46  ;;  %v2049_v44 = vld [vmem:[%s2612_s7 + $0x80] ss:$16 sps:$4 sm:$0xff]   ;;  %v2052_v46 = vld [vmem:[%s2612_s7 + $0x88] ss:$16 sps:$4 sm:$0xff]   ;;  %v2054_v47 = vld [vmem:[%s2612_s7 + $0x8c] ss:$16 sps:$4 sm:$0xff]  }
  0xf2   : > { %v655_v40 = vpop.f32.mrf.mxu0  ;;  %v694_v49 = vpop.f32.mrf.mxu1 }
  0xf3   : > { %1947 = vmatpush3.bf16.xpose.msra.mxu1 %v698_v39  ;;  %v759_v50 = vsel %vm757_vm1, %v753_v48, 0  ;;  %v2045_v39 = vld [vmem:[%s2612_s7 + $0xa4] ss:$16 sps:$4 sm:$0xff]   ;;  %v2048_v40 = vld [vmem:[%s2612_s7 + $0xac] ss:$16 sps:$4 sm:$0xff]  }
  0xf4   : > { %1952 = vmatprep.subr.bf16.mxu1 %v2136_v4  ;;  %v1945_v51 = vpop.f32.mrf.mxu1  ;;  %v2057_v48 = vld [vmem:[%s2612_s7 + $0x64] ss:$16 sps:$4 sm:$0xff]   ;;  %v2060_v49 = vld [vmem:[%s2612_s7 + $0x6c] ss:$16 sps:$4 sm:$0xff]  }
  0xf5   : > { %v2058_v51 = vld [vmem:[%s2612_s7 + $0x68] ss:$16 sps:$4 sm:$0xff]  }
  0xfa   : > { %1949 = vmatmul.mubr.bf16.vlgmr.msra.gmra.mxu1 %v697_v42  ;;  %v2046_v42 = vld [vmem:[%s2612_s7 + $0xa8] ss:$16 sps:$4 sm:$0xff]  }
  0xfb   : > { %1954 = vmatprep.mubr.msk.bf16.mxu1 %vm2137_vm0, %v2136_v4  ;;  %1953 = vmatpush3.bf16.msra.mxu1 %v759_v50  ;;  %v2055_v50 = vld [vmem:[%s2612_s7 + $0x60] ss:$16 sps:$4 sm:$0xff]  }
 0x1ba   : > { %v733_v52 = vpop.f32.mrf.mxu1 }
 0x1bb   : > { %v739_v53 = vmul.f32 0.088388346, %v733_v52  ;;  %v2063_v52 = vld [vmem:[%s2612_s7 + $0x44] ss:$16 sps:$4 sm:$0xff]  }
 0x1bc   : > { %v1950_v54 = vpop.f32.mrf.mxu1 }
 0x1bd   : > { %v741_v55 = vsel %vm740_vm2, %v739_v53, -inf  ;;  %v2061_v54 = vld [vmem:[%s2612_s7 + $0x40] ss:$16 sps:$4 sm:$0xff]  }
 0x1be   : > { %742 = vmax.xlane.f32.xlu0 %v741_v55  ;;  %v736_v56 = vpop.f32.mrf.mxu1  ;;  %v2064_v55 = vld [vmem:[%s2612_s7 + $0x48] ss:$16 sps:$4 sm:$0xff]  }
 0x1bf   : > { %v2069_v56 = vld [vmem:[%s2612_s7 + $0x24] ss:$16 sps:$4 sm:$0xff]  }
 0x1c0   : > { %v1951_v57 = vpop.f32.mrf.mxu1 }
 0x1c1   : > { %v2072_v57 = vld [vmem:[%s2612_s7 + $0x2c] ss:$16 sps:$4 sm:$0xff]  }
 0x247   : > { %v743_v58 = vpop.xlane.xlu0 %742 }
 0x248   : > { %v744_v59 = vsub.f32 %v739_v53, %v743_v58  ;;  %v2066_v53 = vld [vmem:[%s2612_s7 + $0x4c] ss:$16 sps:$4 sm:$0xff]   ;;  %v2067_v58 = vld [vmem:[%s2612_s7 + $0x20] ss:$16 sps:$4 sm:$0xff]  }
 0x24a   : > { %v745_v60 = vmul.f32 1.442695, %v744_v59  ;;  %v2070_v59 = vld [vmem:[%s2612_s7 + $0x28] ss:$16 sps:$4 sm:$0xff]  }
 0x24c   : > { %2111 = vpow2.f32 %v745_v60  ;;  %v2075_v60 = vld [vmem:[%s2612_s7 + $0x4] ss:$16 sps:$4 sm:$0xff]  }
 0x259   : > { %v2112_v61 = vpop.eup %2111 }
 0x25a   : > { %v747_v62 = vsel %vm740_vm2, %v2112_v61, 0.0 }
 0x25b   : > { %748 = vadd.xlane.f32.xlu0 %v747_v62  ;;  %v2073_v62 = vld [vmem:[%s2612_s7] ss:$16 sps:$4 sm:$0xff]  }
 0x2e4   : > { %v749_v8 = vpop.xlane.xlu0 %748 }
 0x2e5   : > { %2113 = vrcp.f32 %v749_v8  ;;  %v1790_v8 = vld [vmem:[%s2611_s6] ss:$0 sm:$0xff] }
 0x2f2   : > { %v2114_v9 = vpop.eup %2113 }
 0x2f3   : > { %v751_v10 = vmul.f32 %v2114_v9, %v2112_v61  ;;  %v2078_v61 = vld [vmem:[%s2612_s7 + $0xc] ss:$16 sps:$4 sm:$0xff]  }
 0x2f5   : > { %v752_v11 = vpack.c.bf16 %v751_v10, %v751_v10 }
 0x2f7   : > { %1955 = vmatmul.mubr.msk.bf16.vlgmr.msra.gmra.mxu1 %vm740_vm2, %v752_v11 }
 0x2f8   : > { %1189 = vmatprep.mubr.bf16.mxu1 %v2135_v2 }
 0x3b7   : > { %v795_v13 = vpop.f32.mrf.mxu1 }
 0x3b8   : > { %v801_v14 = vpack.c.bf16 %v795_v13, %v795_v13  ;;  %v2080_v13 = vld [vmem:[%s2614_s9 + $0xf8] sm:$0xff]  }
 0x3b9   : > { %v1956_v15 = vpop.f32.mrf.mxu1 }
 0x3ba   : > { %1975 = vmatmul.mubr.bf16.vlgmr.msra.gmra.mxu0 %v801_v14  ;;  %v2081_v14 = vld [vmem:[%s2614_s9 + $0x38] sm:$0xff]  }
 0x3bb   : > { %v798_v16 = vpop.f32.mrf.mxu1  ;;  %1230 = vmatprep.mubr.bf16.mxu0 %v2135_v2  ;;  %v2033_v2 = vld [vmem:[%s2612_s7 + $0xe4] ss:$16 sps:$4 sm:$0xff]   ;;  %1199 = vmatpush1.bf16.msra.mxu0 %v2034_v26  ;;  %v2082_v15 = vld [vmem:[%s2614_s9 + $0xb8] sm:$0xff]  }
 0x3bc   : > { %1157 = vmatprep.subr.bf16.mxu1 %v2033_v2  ;;  %1200 = vmatprep.subr.bf16.mxu0 %v2042_v31  ;;  %v2083_v16 = vld [vmem:[%s2614_s9 + $0x70] sm:$0xff]   ;;  %v2093_v2 = vld [vmem:[%s2614_s9 + $0x20] sm:$0xff]   ;;  %v2097_v31 = vld [vmem:[%s2614_s9 + $0x18] sm:$0xff]  }
 0x3bd   : > { %v1957_v4 = vpop.f32.mrf.mxu1  ;;  %1158 = vmatpush1.bf16.msra.mxu1 %v2031_v25  ;;  %v2092_v25 = vld [vmem:[%s2614_s9 + $0xe0] sm:$0xff]  }
 0x3be   : > { %v2084_v4 = vld [vmem:[%s2614_s9 + $0xf0] sm:$0xff]   ;;  %v2094_v26 = vld [vmem:[%s2614_s9 + $0xa0] sm:$0xff]  }
 0x3bf   : > { %1201 = vmatpush1.bf16.msra.mxu0 %v2040_v34  ;;  %v2099_v34 = vld [vmem:[%s2614_s9 + $0x50] sm:$0xff]  }
 0x3c0   : > { %1202 = vmatprep.subr.bf16.mxu0 %v2048_v40  ;;  %v2105_v40 = vld [vmem:[%s2614_s9 + $0x8] sm:$0xff]  }
 0x3c3   : > { %1203 = vmatpush1.bf16.msra.mxu0 %v2046_v42  ;;  %v2107_v42 = vld [vmem:[%s2614_s9 + $0x40] sm:$0xff]  }
 0x3c4   : > { %1204 = vmatprep.subr.bf16.mxu0 %v2054_v47  ;;  %v975_v47 = vld [vmem:[%s2613_s8] sm:$0xf] }
 0x3c7   : > { %1205 = vmatpush1.bf16.msra.mxu0 %v2052_v46  ;;  %v2110_v46 = vld [vmem:[%s2614_s9 + $0x80] sm:$0xff]  }
 0x3c8   : > { %1206 = vmatprep.subr.bf16.mxu0 %v2060_v49  ;;  %v980_v49 = vrot.slane %v975_v47, %v475_v33 }
 0x3cb   : > { %1207 = vmatpush1.bf16.msra.mxu0 %v2058_v51  ;;  %v984_v51 = vrot.slane %v975_v47, %v479_v30 }
 0x3cc   : > { %1208 = vmatprep.subr.bf16.mxu0 %v2066_v53 }
 0x3cf   : > { %1209 = vmatpush1.bf16.msra.mxu0 %v2064_v55 }
 0x3d0   : > { %1210 = vmatprep.subr.bf16.mxu0 %v2072_v57 }
 0x3d3   : > { %1211 = vmatpush1.bf16.msra.mxu0 %v2070_v59 }
 0x3d4   : > { %1212 = vmatprep.subr.bf16.mxu0 %v2078_v61 }
 0x3d7   : > { %1213 = vmatpush1.bf16.msra.mxu0 %v2076_v63 }
 0x3d8   : > { %1904 = vmatprep.subr.bf16.mxu0 %v2080_v13 }
 0x47a   : > { %v907_v18 = vpop.f32.mrf.mxu0 }
 0x47b   : > { %v908_v19 = vadd.f32 %v1780_v17, %v907_v18  ;;  %v2085_v17 = vld [vmem:[%s2614_s9 + $0x30] sm:$0xff]  }
 0x47c   : > { %v1976_v20 = vpop.f32.mrf.mxu0  ;;  %v2086_v18 = vld [vmem:[%s2614_s9 + $0xb0] sm:$0xff]  }
 0x47d   : > { %v913_v21 = vadd.f32 %v908_v19, %v2291_v23  ;;  %v2039_v23 = vld [vmem:[%s2612_s7 + $0xc4] ss:$16 sps:$4 sm:$0xff]   ;;  %v2087_v19 = vld [vmem:[%s2614_s9 + $0x68] sm:$0xff]  }
 0x47e   : > { %v910_v22 = vpop.f32.mrf.mxu0  ;;  %1159 = vmatprep.subr.bf16.mxu1 %v2039_v23  ;;  %v2088_v20 = vld [vmem:[%s2614_s9 + $0xe8] sm:$0xff]   ;;  %v2096_v23 = vld [vmem:[%s2614_s9 + $0xd8] sm:$0xff]  }
 0x47f   : > { %916 = vadd.xlane.f32.xlu1 %v913_v21  ;;  %1160 = vmatpush1.bf16.msra.mxu1 %v2037_v32  ;;  %v2090_v22 = vld [vmem:[%s2614_s9 + $0xa8] sm:$0xff]   ;;  %v2098_v32 = vld [vmem:[%s2614_s9 + $0x98] sm:$0xff]  }
 0x480   : > { %v1977_v24 = vpop.f32.mrf.mxu0  ;;  %1161 = vmatprep.subr.bf16.mxu1 %v2045_v39  ;;  %v2104_v39 = vld [vmem:[%s2614_s9 + $0xc8] sm:$0xff]  }
 0x481   : > { %v2091_v24 = vld [vmem:[%s2614_s9 + $0x60] sm:$0xff]  }
 0x483   : > { %1162 = vmatpush1.bf16.msra.mxu1 %v2043_v41  ;;  %v2106_v41 = vld [vmem:[%s2614_s9 + $0x88] sm:$0xff]  }
 0x484   : > { %1163 = vmatprep.subr.bf16.mxu1 %v2051_v45  ;;  %v2109_v45 = vld [vmem:[%s2614_s9] sm:$0xff]  }
 0x487   : > { %1164 = vmatpush1.bf16.msra.mxu1 %v2049_v44  ;;  %v2108_v44 = vld [vmem:[%s2614_s9 + $0xc0] sm:$0xff]  }
 0x488   : > { %1165 = vmatprep.subr.bf16.mxu1 %v2057_v48  ;;  %v991_v48 = vsub.s32 3, %v2317_v29 }
 0x48b   : > { %1166 = vmatpush1.bf16.msra.mxu1 %v2055_v50  ;;  %v988_v50 = vrot.slane %v975_v47, %v483_v43 }
 0x48c   : > { %1167 = vmatprep.subr.bf16.mxu1 %v2063_v52  ;;  %v992_v52 = vrot.slane %v975_v47, %v991_v48 }
 0x48f   : > { %1168 = vmatpush1.bf16.msra.mxu1 %v2061_v54 }
 0x490   : > { %1169 = vmatprep.subr.bf16.mxu1 %v2069_v56 }
 0x493   : > { %1170 = vmatpush1.bf16.msra.mxu1 %v2067_v58 }
 0x494   : > { %1171 = vmatprep.subr.bf16.mxu1 %v2075_v60 }
 0x497   : > { %1172 = vmatpush1.bf16.msra.mxu1 %v2073_v62 }
 0x498   : > { %1882 = vmatprep.subr.bf16.mxu1 %v2079_v12 }
 0x508   : > { %v917_v35 = vpop.xlane.xlu1 %916 }
 0x509   : > { %v919_v36 = vmul.f32 0.0078125, %v917_v35  ;;  %v2100_v35 = vld [vmem:[%s2614_s9 + $0xd0] sm:$0xff]  }
 0x50b   : > { %v920_v37 = vsub.f32 %v913_v21, %v919_v36  ;;  %v2089_v21 = vld [vmem:[%s2614_s9 + $0x28] sm:$0xff]   ;;  %v2101_v36 = vld [vmem:[%s2614_s9 + $0x10] sm:$0xff]  }
 0x50d   : > { %v921_v38 = vmul.f32 %v920_v37, %v920_v37 }
 0x50f   : > { %922 = vadd.xlane.f32.xlu1 %v921_v38  ;;  %v2103_v38 = vld [vmem:[%s2614_s9 + $0x48] sm:$0xff]  }
 0x598   : > { %v923_v0 = vpop.xlane.xlu1 %922 }
 0x599   : > { %v924_v1 = vmul.f32 0.0078125, %v923_v0 }
 0x59b   : > { %v925_v3 = vadd.f32 1e-05, %v924_v1 }
 0x59d   : > { %2115 = vrsqrt.f32 %v925_v3 }
 0x5aa   : > { %v2116_v5 = vpop.eup %2115 }
 0x5ab   : > { %v927_v7 = vmul.f32 %v2116_v5, %v920_v37  ;;  %v2102_v37 = vld [vmem:[%s2614_s9 + $0x90] sm:$0xff]  }
 0x5ad   : > { %v934_v9 = vmul.f32 %v1789_v6, %v927_v7 }
 0x5af   : > { %v2476_v10 = vadd.f32 %v1790_v8, %v934_v9 }
 0x5b1   : > { %v942_v11 = vpack.c.bf16 %v2476_v10, %v2476_v10 }
 0x5b3   : > { %1190 = vmatmul.mubr.bf16.vlgmr.msra.gmra.mxu1 %v942_v11  ;;  %1231 = vmatmul.mubr.bf16.vlgmr.msra.gmra.mxu0 %v942_v11 }
 0x5b4   : > { %1883 = vmatpush3.bf16.msra.mxu1 %v2081_v14  ;;  %1905 = vmatpush3.bf16.msra.mxu0 %v2082_v15 }
 0x5b5   : > { %1884 = vmatprep.subr.bf16.mxu1 %v2083_v16  ;;  %1906 = vmatprep.subr.bf16.mxu0 %v2084_v4 }
 0x5b8   : > { %1885 = vmatpush3.bf16.msra.mxu1 %v2085_v17  ;;  %1907 = vmatpush3.bf16.msra.mxu0 %v2086_v18 }
 0x5b9   : > { %1886 = vmatprep.subr.bf16.mxu1 %v2087_v19  ;;  %1908 = vmatprep.subr.bf16.mxu0 %v2088_v20 }
 0x5bc   : > { %1887 = vmatpush3.bf16.msra.mxu1 %v2089_v21  ;;  %1909 = vmatpush3.bf16.msra.mxu0 %v2090_v22 }
 0x5bd   : > { %1888 = vmatprep.subr.bf16.mxu1 %v2091_v24  ;;  %1910 = vmatprep.subr.bf16.mxu0 %v2092_v25 }
 0x5c0   : > { %1889 = vmatpush3.bf16.msra.mxu1 %v2093_v2  ;;  %1911 = vmatpush3.bf16.msra.mxu0 %v2094_v26 }
 0x5c1   : > { %1890 = vmatprep.subr.bf16.mxu1 %v2095_v27  ;;  %1912 = vmatprep.subr.bf16.mxu0 %v2096_v23 }
 0x5c4   : > { %1891 = vmatpush3.bf16.msra.mxu1 %v2097_v31  ;;  %1913 = vmatpush3.bf16.msra.mxu0 %v2098_v32 }
 0x5c5   : > { %1892 = vmatprep.subr.bf16.mxu1 %v2099_v34  ;;  %1914 = vmatprep.subr.bf16.mxu0 %v2100_v35 }
 0x5c8   : > { %1893 = vmatpush3.bf16.msra.mxu1 %v2101_v36  ;;  %1915 = vmatpush3.bf16.msra.mxu0 %v2102_v37 }
 0x5c9   : > { %1894 = vmatprep.subr.bf16.mxu1 %v2103_v38  ;;  %1916 = vmatprep.subr.bf16.mxu0 %v2104_v39 }
 0x5cc   : > { %1895 = vmatpush3.bf16.msra.mxu1 %v2105_v40  ;;  %1917 = vmatpush3.bf16.msra.mxu0 %v2106_v41 }
 0x5cd   : > { %1896 = vmatprep.subr.bf16.mxu1 %v2107_v42  ;;  %1918 = vmatprep.subr.bf16.mxu0 %v2108_v44 }
 0x5d0   : > { %1897 = vmatpush3.bf16.msra.mxu1 %v2109_v45  ;;  %1919 = vmatpush3.bf16.msra.mxu0 %v2110_v46  ;;  %v1823_v46 = vld [vmem:[%s2615_s10] ss:$0 sm:$0xff] }
 0x673   : > { %v1191_v53 = vpop.f32.mrf.mxu1  ;;  %v1232_v54 = vpop.f32.mrf.mxu0 }
 0x674   : > { %v1192_v55 = vadd.f32 %v1191_v53, %v980_v49  ;;  %v1233_v56 = vadd.f32 %v1232_v54, %v988_v50 }
 0x675   : > { %v1193_v57 = vpop.f32.mrf.mxu1  ;;  %v1234_v58 = vpop.f32.mrf.mxu0 }
 0x676   : > { %v1243_v59 = vmul.f32 0.044715, %v1192_v55  ;;  %v1245_v60 = vmul.f32 0.044715, %v1233_v56  ;;  %v1194_v61 = vadd.f32 %v1193_v57, %v984_v51  ;;  %v1235_v62 = vadd.f32 %v1234_v58, %v992_v52 }
 0x677   : > { %v1195_v63 = vpop.f32.mrf.mxu1  ;;  %v1236_v0 = vpop.f32.mrf.mxu0  ;;  %v1239_v25 = vmul.f32 0.5, %v1192_v55  ;;  %v1241_v31 = vmul.f32 0.5, %v1233_v56 }
 0x678   : > { %v1247_v33 = vmul.f32 %v1243_v59, %v1192_v55  ;;  %v1249_v1 = vmul.f32 %v1245_v60, %v1233_v56  ;;  %v1244_v3 = vmul.f32 0.044715, %v1194_v61  ;;  %v1246_v43 = vmul.f32 0.044715, %v1235_v62 }
 0x679   : > { %v1196_v5 = vpop.f32.mrf.mxu1  ;;  %v1237_v6 = vpop.f32.mrf.mxu0  ;;  %v1240_v27 = vmul.f32 0.5, %v1194_v61  ;;  %v1242_v32 = vmul.f32 0.5, %v1235_v62 }
 0x67a   : > { %v1251_v30 = vmul.f32 %v1247_v33, %v1192_v55  ;;  %v1253_v7 = vmul.f32 %v1249_v1, %v1233_v56  ;;  %v1248_v8 = vmul.f32 %v1244_v3, %v1194_v61  ;;  %v1250_v9 = vmul.f32 %v1246_v43, %v1235_v62  ;;  %v1856_v1 = vld [vmem:[%s2616_s11] ss:$0 sm:$0xff] }
 0x67c   : > { %v1255_v11 = vadd.f32 %v1251_v30, %v1192_v55  ;;  %v1257_v12 = vadd.f32 %v1253_v7, %v1233_v56  ;;  %v1252_v13 = vmul.f32 %v1248_v8, %v1194_v61  ;;  %v1254_v14 = vmul.f32 %v1250_v9, %v1235_v62 }
 0x67d   : > { %v2138_v30 = vmov 1966171168  }
 0x67e   : > { %v1259_v15 = vmul.f32 0.7978846, %v1255_v11  ;;  %v1261_v16 = vmul.f32 0.7978846, %v1257_v12  ;;  %v1256_v4 = vadd.f32 %v1252_v13, %v1194_v61  ;;  %v1258_v17 = vadd.f32 %v1254_v14, %v1235_v62 }
 0x67f   : > { %v1669_v7 = vunpack.c.l.s4 %v2138_v30 }
 0x680   : > { %v1260_v18 = vmul.f32 0.7978846, %v1256_v4  ;;  %v1262_v19 = vmul.f32 0.7978846, %v1258_v17  ;;  %2117 = vtanh.f32 %v1259_v15 }
 0x681   : > { %2119 = vtanh.f32 %v1261_v16  ;;  %v1670_v13 = vunpack.c.0.s8 %v1669_v7 }
 0x682   : > { %2121 = vtanh.f32 %v1260_v18 }
 0x683   : > { %2123 = vtanh.f32 %v1262_v19  ;;  %v1673_v17 = vsub.s32 %v1670_v13, %v2317_v29 }
 0x68d   : > { %v2118_v20 = vpop.eup %2117 }
 0x68e   : > { %v2120_v21 = vpop.eup %2119  ;;  %v1267_v22 = vadd.f32 1.0, %v2118_v20 }
 0x68f   : > { %v2122_v24 = vpop.eup %2121  ;;  %v1269_v2 = vadd.f32 1.0, %v2120_v21 }
 0x690   : > { %v2124_v26 = vpop.eup %2123  ;;  %v1268_v23 = vadd.f32 1.0, %v2122_v24  ;;  %v1271_v35 = vmul.f32 %v1267_v22, %v1239_v25 }
 0x691   : > { %v1270_v34 = vadd.f32 1.0, %v2124_v26  ;;  %v1273_v37 = vmul.f32 %v1269_v2, %v1241_v31 }
 0x692   : > { %v1272_v36 = vmul.f32 %v1268_v23, %v1240_v27  ;;  %v1275_v41 = vpack.c.bf16 %v1271_v35, %v1271_v35 }
 0x693   : > { %v1274_v38 = vmul.f32 %v1270_v34, %v1242_v32  ;;  %v1277_v42 = vpack.c.bf16 %v1273_v37, %v1273_v37 }
 0x694   : > { %v1276_v39 = vpack.c.bf16 %v1272_v36, %v1272_v36 }
 0x695   : > { %v1278_v40 = vpack.c.bf16 %v1274_v38, %v1274_v38 }
 0x696   : > { %1574 = vmatprep.mubr.bf16.mxu1 %v1276_v39 }
 0x697   : > { %1614 = vmatprep.mubr.bf16.mxu0 %v1278_v40  ;;  %1575 = vmatmul.mubr.bf16.vlgmr.msra.gmra.mxu1 %v1275_v41 }
 0x698   : > { %1615 = vmatmul.mubr.bf16.vlgmr.msra.gmra.mxu0 %v1277_v42 }
 0x757   : > { %v1898_v44 = vpop.f32.mrf.mxu1 }
 0x758   : > { %v1920_v45 = vpop.f32.mrf.mxu0 }
 0x759   : > { %v1899_v47 = vpop.f32.mrf.mxu1 }
 0x75a   : > { %v1900_v48 = vadd.f32 %v1899_v47, %v1898_v44  ;;  %v1921_v49 = vpop.f32.mrf.mxu0 }
 0x75b   : > { %v1901_v50 = vpop.f32.mrf.mxu1  ;;  %v1922_v52 = vadd.f32 %v1921_v49, %v1920_v45 }
 0x75c   : > { %v1577_v51 = vadd.f32 %v1900_v48, %v1823_v46  ;;  %v1923_v53 = vpop.f32.mrf.mxu0 }
 0x75d   : > { %v1902_v54 = vpop.f32.mrf.mxu1 }
 0x75e   : > { %v1617_v55 = vadd.f32 %v1922_v52, %v1577_v51  ;;  %v1924_v56 = vpop.f32.mrf.mxu0 }
 0x760   : > { %v1622_v57 = vadd.f32 %v1617_v55, %v2476_v10  ;;  %v1857_v10 = vld [vmem:[%s2617_s12] ss:$0 sm:$0xff] }
 0x762   : > { %1625 = vadd.xlane.f32.xlu0 %v1622_v57 }
 0x7eb   : > { %v1626_v58 = vpop.xlane.xlu0 %1625 }
 0x7ec   : > { %v1627_v59 = vmul.f32 0.0078125, %v1626_v58 }
 0x7ee   : > { %v1628_v60 = vsub.f32 %v1622_v57, %v1627_v59 }
 0x7f0   : > { %v1629_v61 = vmul.f32 %v1628_v60, %v1628_v60 }
 0x7f2   : > { %1630 = vadd.xlane.f32.xlu1 %v1629_v61 }
 0x87b   : > { %v1631_v62 = vpop.xlane.xlu1 %1630 }
 0x87c   : > { %v1632_v63 = vmul.f32 0.0078125, %v1631_v62 }
 0x87e   : > { %v1633_v0 = vadd.f32 1e-05, %v1632_v63 }
 0x880   : > { %2125 = vrsqrt.f32 %v1633_v0 }
 0x88d   : > { %v2126_v33 = vpop.eup %2125 }
 0x88e   : > { %v1635_v3 = vmul.f32 %v2126_v33, %v1628_v60 }
 0x890   : > { %v1642_v43 = vmul.f32 %v1856_v1, %v1635_v3 }
 0x892   : > { %v1649_v5 = vadd.f32 %v1857_v10, %v1642_v43 }
 0x894   : > { %v1650_v6 = vrot.slane %v1649_v5, 4 }
 0x896   : > { %v1651_v8 = vmax.f32 %v1649_v5, %v1650_v6  ;;  %v1657_v9 = vadd.f32 %v1650_v6, %v1649_v5 }
 0x898   : > { %v1652_v11 = vrot.slane %v1651_v8, 2  ;;  %v1658_v12 = vrot.slane %v1657_v9, 2 }
 0x89a   : > { %v1653_v14 = vmax.f32 %v1651_v8, %v1652_v11  ;;  %v1659_v15 = vadd.f32 %v1658_v12, %v1657_v9 }
 0x89c   : > { %v1654_v16 = vrot.slane %v1653_v14, 1  ;;  %v1660_v4 = vrot.slane %v1659_v15, 1 }
 0x89e   : > { %v1655_v18 = vmax.f32 %v1653_v14, %v1654_v16  ;;  %v1661_v19 = vadd.f32 %v1660_v4, %v1659_v15 }
 0x8a0   : > { %v1663_v20 = vmul.f32 0.125, %v1661_v19  ;;  %v1667_v21 = vcombine.low %v1649_v5, %v1655_v18 }
 0x8a2   : > { %v1674_v22 = vrot.slane %v1667_v21, %v1673_v17  ;;  %v1681_v24 = vrot.slane %v1663_v20, %v1673_v17 }
 0x8a4   : > { %v1682_v25 = vcombine.low %v1674_v22, %v1681_v24 }
 0x8a6   : > { %v1689_v2 = vrot.slane %v1682_v25, %v1673_v17 }
 0x8a8   : > { %1695 = vst.msk [vmem:[%s435_s15] sm:$0x7] %vm1693_vm3, %v1689_v2 }
 0x8a9 PF: > { %s23_s25 = sadd.s32 1, %s2133_s25  }
 0x8aa   : > { %p20_p4 = scmp.ge.s32.totalorder %s23_s25, 4  }
 0x8ac   :  { %22 = sbr.rel (!%p20_p4) target bundleno = 1 (0x1), region = 102 }

</bundles_post_ra>
